<compile_context>
chip_gen: v5e
topology: v5e:2x2
jax: 0.10.0
libtpu: 0.0.40
codegen_flags: <defaults>
</compile_context>

<pallas_src>
import jax
import jax.numpy as jnp
from jax import lax
from jax.experimental import pallas as pl
from jax.experimental.pallas import tpu as pltpu

ADJ_SIZE = 40
CROP_LEN = 10
N_CROPS = 4
BN_EPS = 1e-5


# ---------------------------------------------------------------------------
# Fused kernel: two MXU matmuls + collapsed BatchNorm, everything VMEM-resident.
#   x_ref      : (B*N, F_in)      flattened node features
#   adjbig_ref : (B*N, B*N)       block-diagonal masked adjacency (crop mask pre-folded)
#   w_ref      : (F_in, F_out)
#   params_ref : (2, N, F_out)    [0] = gamma_own * out_mask, [1] = beta_sum * out_mask
#   out_ref    : (B, N, F_out)
# ---------------------------------------------------------------------------
def _fused_kernel(x_ref, adjbig_ref, w_ref, params_ref, out_ref):
    B = out_ref.shape[0]
    N = out_ref.shape[1]

    # Hoisted support matmul: one (B*N, F_in) @ (F_in, F_out) MXU op for all crops/batches.
    support_all = jnp.dot(x_ref[...], w_ref[...],
                          preferred_element_type=jnp.float32)         # (B*N, F_out)

    # One block-diagonal (B*N, B*N) @ (B*N, F_out) matmul replaces the per-batch
    # masked-adjacency loop (mask folded into adjbig on the host).
    block_all = jnp.dot(adjbig_ref[...], support_all,
                        preferred_element_type=jnp.float32)           # (B*N, F_out)

    # Per-batch crop outputs as static, sublane-aligned slices (multiples of N=40).
    blocks = [block_all[b * N:(b + 1) * N, :] for b in range(B)]

    # Collapsed per-crop BatchNorm1d (training mode, biased variance over the batch).
    # Each (row, feature) takes batch stats only from its own crop; the other three
    # crops contribute exactly their beta on their zero rows -> folded into params[1].
    if B == 2:
        a, b2 = blocks
        d = a - b2
        mean = 0.5 * (a + b2)
        var = 0.25 * d * d
    else:
        s = blocks[0]
        for t in blocks[1:]:
            s = s + t
        mean = s * (1.0 / B)
        sq = (blocks[0] - mean) * (blocks[0] - mean)
        for t in blocks[1:]:
            dd = t - mean
            sq = sq + dd * dd
        var = sq * (1.0 / B)

    inv_std = lax.rsqrt(var + BN_EPS)

    scale = inv_std * params_ref[0]   # inv_std * gamma_own * out_mask
    shift = params_ref[1]             # beta_sum * out_mask

    for b in range(B):
        out_ref[b] = ((blocks[b] - mean) * scale + shift).astype(out_ref.dtype)


# ---------------------------------------------------------------------------
# Host-side param prep (hoistable out of the per-step jit when BN params are
# loop-invariant in the surrounding model).
# ---------------------------------------------------------------------------
def _prepare_bn_params(bn_gamma, bn_beta, out_mask):
    # gamma of each row's own crop via static slicing (no TPU gather).
    gamma_own = jnp.concatenate(
        [bn_gamma[c, c * CROP_LEN:(c + 1) * CROP_LEN, :] for c in range(N_CROPS)],
        axis=0)                                        # (N, F_out)
    beta_sum = jnp.sum(bn_beta, axis=0)                # (N, F_out)
    scale_base = gamma_own * out_mask
    shift = beta_sum * out_mask
    return jnp.stack([scale_base, shift], axis=0)      # (2, N, F_out) -> one DMA


# ---------------------------------------------------------------------------
# Wrapper (single jitted definition).
# ---------------------------------------------------------------------------
@jax.jit
def block_convolution_1(x, adj, weight, bn_gamma, bn_beta, out_mask):
    B, N, f_in = x.shape
    f_out = weight.shape[1]

    x2d = x.reshape(B * N, f_in)

    # Block-diagonal crop mask, folded into a block-diagonal-of-block-diagonals
    # (B*N, B*N) adjacency so the kernel does a single propagation matmul.
    rows = jnp.arange(N)
    crop_of_row = rows // CROP_LEN
    bd = (crop_of_row[:, None] == crop_of_row[None, :]).astype(x.dtype)   # (N, N)
    adj_big = jnp.zeros((B * N, B * N), x.dtype)
    for b in range(B):
        adj_big = adj_big.at[b * N:(b + 1) * N, b * N:(b + 1) * N].set(adj[b] * bd)

    params = _prepare_bn_params(bn_gamma, bn_beta, out_mask)

    vmem = pl.BlockSpec(memory_space=pltpu.MemorySpace.VMEM)

    itemsize = 4
    flops = 2 * (B * N) * f_in * f_out + 2 * (B * N) * (B * N) * f_out
    bytes_accessed = itemsize * (B * N * f_in + (B * N) * (B * N)
                                 + f_in * f_out + 2 * N * f_out + B * N * f_out)

    # Whole problem in one VMEM-resident kernel (no grid). For much larger shapes a
    # "parallel" grid over the independent crop axis could feed v7x's second TensorCore;
    # at B=2/N=40 the per-step grid overhead would exceed any win.
    out = pl.pallas_call(
        _fused_kernel,
        out_shape=jax.ShapeDtypeStruct((B, N, f_out), jnp.float32),
        in_specs=[vmem, vmem, vmem, vmem],
        out_specs=pl.BlockSpec(memory_space=pltpu.MemorySpace.VMEM),
        cost_estimate=pl.CostEstimate(
            flops=flops, transcendentals=N * f_out, bytes_accessed=bytes_accessed),
    )(x2d, adj_big, weight, params)
    return out


# ---------------------------------------------------------------------------
# Pure-JAX reference (mirrors the PyTorch forward in training mode)
# ---------------------------------------------------------------------------
def reference(x, adj, weight, bn_gamma, bn_beta, out_mask):
    B, N, _ = x.shape
    f_out = weight.shape[1]
    support = jnp.einsum("bnf,fo->bno", x, weight)
    total = jnp.zeros((B, N, f_out), jnp.float32)
    for c in range(N_CROPS):
        s, e = c * CROP_LEN, (c + 1) * CROP_LEN
        m = jnp.zeros((N, N), jnp.float32).at[s:e, s:e].set(1.0)
        o = jnp.einsum("bnm,bmo->bno", adj * m[None], support)
        flat = o.reshape(B, -1)
        mean = flat.mean(axis=0, keepdims=True)
        var = ((flat - mean) ** 2).mean(axis=0, keepdims=True)
        flat = (flat - mean) / jnp.sqrt(var + BN_EPS)
        flat = flat * bn_gamma[c].reshape(1, -1) + bn_beta[c].reshape(1, -1)
        total = total + flat.reshape(B, N, f_out)
    return total * out_mask[None]


if __name__ == "__main__":
    B, N, F_IN, F_OUT = 2, ADJ_SIZE, 16, 8

    key = jax.random.PRNGKey(0)
    k_w, k_x, k_adj, k_g, k_b = jax.random.split(key, 5)

    # Weight init matching reset_parameters(): uniform(-stdv, stdv), stdv = 1/sqrt(out_features)
    stdv = 1.0 / (F_OUT ** 0.5)
    weight = jax.random.uniform(k_w, (F_IN, F_OUT), jnp.float32, minval=-stdv, maxval=stdv)

    # BatchNorm1d affine params (at module init these are ones/zeros; perturbed here to
    # exercise the full gamma/beta algebra, including beta on zero rows).
    bn_gamma = 1.0 + 0.1 * jax.random.normal(k_g, (N_CROPS, N, F_OUT), jnp.float32)
    bn_beta = 0.1 * jax.random.normal(k_b, (N_CROPS, N, F_OUT), jnp.float32)
    # out_mask in the module is all ones
    out_mask = jnp.ones((N, F_OUT), jnp.float32)

    x = jax.random.normal(k_x, (B, N, F_IN), jnp.float32)
    adj = jax.random.normal(k_adj, (B, N, N), jnp.float32)

    out = block_convolution_1(x, adj, weight, bn_gamma, bn_beta, out_mask)
    out = jax.block_until_ready(out)

    ref = reference(x, adj, weight, bn_gamma, bn_beta, out_mask)
    max_err = float(jnp.max(jnp.abs(out - ref)))
    assert out.shape == (B, N, F_OUT), out.shape
    assert max_err < 1e-2, f"max abs err {max_err}"

    # TODO(synk): BatchNorm running_mean/running_var side-effect buffer updates are not
    # modeled (they do not affect the training-mode forward output).
    print("KERNEL_OK")
</pallas_src>

<mosaic_0001>
module attributes {stable_mosaic.version = 11 : i64} {
  func.func @_fused_kernel(%arg0: memref<80x16xf32, #tpu.memory_space<vmem>>, %arg1: memref<80x80xf32, #tpu.memory_space<vmem>>, %arg2: memref<16x8xf32, #tpu.memory_space<vmem>>, %arg3: memref<2x40x8xf32, #tpu.memory_space<vmem>>, %arg4: memref<2x40x8xf32, #tpu.memory_space<vmem>>) attributes {dimension_semantics = [], scalar_prefetch = 0 : i64, scratch_operands = 0 : i64, tpu.core_type = #tpu.core_type<tc>} {
    %c0 = arith.constant 0 : index
    %c0_0 = arith.constant 0 : index
    %0 = vector.load %arg0[%c0, %c0_0] : memref<80x16xf32, #tpu.memory_space<vmem>>, vector<80x16xf32>
    %c0_1 = arith.constant 0 : index
    %c0_2 = arith.constant 0 : index
    %1 = vector.load %arg2[%c0_1, %c0_2] : memref<16x8xf32, #tpu.memory_space<vmem>>, vector<16x8xf32>
    %cst = arith.constant dense<0.000000e+00> : vector<80x8xf32>
    %2 = tpu.matmul %0, %1, %cst {dimension_numbers = #tpu.dot_dimension_numbers<[1], [0], [0], [1], [0, 0, 1, 1], [], []>} : vector<80x16xf32>, vector<16x8xf32>, vector<80x8xf32> -> vector<80x8xf32>
    %c0_3 = arith.constant 0 : index
    %c0_4 = arith.constant 0 : index
    %3 = vector.load %arg1[%c0_3, %c0_4] : memref<80x80xf32, #tpu.memory_space<vmem>>, vector<80x80xf32>
    %cst_5 = arith.constant dense<0.000000e+00> : vector<80x8xf32>
    %4 = tpu.matmul %3, %2, %cst_5 {dimension_numbers = #tpu.dot_dimension_numbers<[1], [0], [0], [1], [0, 0, 1, 1], [], []>} : vector<80x80xf32>, vector<80x8xf32>, vector<80x8xf32> -> vector<80x8xf32>
    %5 = vector.extract_strided_slice %4 {offsets = [0, 0], sizes = [40, 8], strides = [1, 1]} : vector<80x8xf32> to vector<40x8xf32>
    %6 = vector.extract_strided_slice %4 {offsets = [40, 0], sizes = [40, 8], strides = [1, 1]} : vector<80x8xf32> to vector<40x8xf32>
    %7 = arith.subf %5, %6 : vector<40x8xf32>
    %8 = arith.addf %5, %6 : vector<40x8xf32>
    %cst_6 = arith.constant 5.000000e-01 : f32
    %9 = vector.broadcast %cst_6 : f32 to vector<40x8xf32>
    %10 = arith.mulf %9, %8 : vector<40x8xf32>
    %cst_7 = arith.constant 2.500000e-01 : f32
    %11 = vector.broadcast %cst_7 : f32 to vector<40x8xf32>
    %12 = arith.mulf %11, %7 : vector<40x8xf32>
    %13 = arith.mulf %12, %7 : vector<40x8xf32>
    %cst_8 = arith.constant 9.99999974E-6 : f32
    %14 = vector.broadcast %cst_8 : f32 to vector<40x8xf32>
    %15 = arith.addf %13, %14 : vector<40x8xf32>
    %16 = math.rsqrt %15 : vector<40x8xf32>
    %c0_9 = arith.constant 0 : index
    %c0_10 = arith.constant 0 : index
    %c0_11 = arith.constant 0 : index
    %17 = vector.load %arg3[%c0_9, %c0_10, %c0_11] : memref<2x40x8xf32, #tpu.memory_space<vmem>>, vector<1x40x8xf32>
    %18 = vector.shape_cast %17 : vector<1x40x8xf32> to vector<40x8xf32>
    %19 = arith.mulf %16, %18 : vector<40x8xf32>
    %c1 = arith.constant 1 : index
    %c0_12 = arith.constant 0 : index
    %c0_13 = arith.constant 0 : index
    %20 = vector.load %arg3[%c1, %c0_12, %c0_13] : memref<2x40x8xf32, #tpu.memory_space<vmem>>, vector<1x40x8xf32>
    %21 = vector.shape_cast %20 : vector<1x40x8xf32> to vector<40x8xf32>
    %22 = arith.subf %5, %10 : vector<40x8xf32>
    %23 = arith.mulf %22, %19 : vector<40x8xf32>
    %24 = arith.addf %23, %21 : vector<40x8xf32>
    %c0_14 = arith.constant 0 : index
    %c0_15 = arith.constant 0 : index
    %c0_16 = arith.constant 0 : index
    %25 = vector.load %arg4[%c0_14, %c0_15, %c0_16] : memref<2x40x8xf32, #tpu.memory_space<vmem>>, vector<1x40x8xf32>
    %26 = vector.shape_cast %25 : vector<1x40x8xf32> to vector<40x8xf32>
    %27 = vector.shape_cast %24 : vector<40x8xf32> to vector<1x40x8xf32>
    tpu.vector_store %arg4[%c0_14, %c0_15, %c0_16], %27 {strides = array<i32>} : memref<2x40x8xf32, #tpu.memory_space<vmem>>, vector<1x40x8xf32>,
    %28 = arith.subf %6, %10 : vector<40x8xf32>
    %29 = arith.mulf %28, %19 : vector<40x8xf32>
    %30 = arith.addf %29, %21 : vector<40x8xf32>
    %c1_17 = arith.constant 1 : index
    %c0_18 = arith.constant 0 : index
    %c0_19 = arith.constant 0 : index
    %31 = vector.load %arg4[%c1_17, %c0_18, %c0_19] : memref<2x40x8xf32, #tpu.memory_space<vmem>>, vector<1x40x8xf32>
    %32 = vector.shape_cast %31 : vector<1x40x8xf32> to vector<40x8xf32>
    %33 = vector.shape_cast %30 : vector<40x8xf32> to vector<1x40x8xf32>
    tpu.vector_store %arg4[%c1_17, %c0_18, %c0_19], %33 {strides = array<i32>} : memref<2x40x8xf32, #tpu.memory_space<vmem>>, vector<1x40x8xf32>,
    return
  }
}

</mosaic_0001>

<bundles_post_ra>
// kernel: block_convolution_1.1
= control target key start
LH: loop header
LB: loop body
LE: loop exit
PB: predicated region body
PF: predicated region fallthrough
CT: control target
= control target key end

     0   :  { %vm29_vm0 = vcmask 130048   ;;  %vm117_vm1 = vcmask 654336   ;;  %vm306_vm3 = vcmask 64512   ;;  %s663_s2 = inlined_call_operand.vmem [shape: f32[16,8], index: 2, kind: input, shape index: {}]   ;;  %s664_s0 = inlined_call_operand.vmem [shape: f32[80,16], index: 0, kind: input, shape index: {}]   ;;  %s665_s1 = inlined_call_operand.vmem [shape: f32[80,80], index: 1, kind: input, shape index: {}]   ;;  %s666_s3 = inlined_call_operand.vmem [shape: f32[2,40,8], index: 3, kind: input, shape index: {}]   ;;  %s667_s4 = inlined_call_operand.vmem [shape: f32[2,40,8], index: 4, kind: output, shape index: {}]  }
   0x1   :  { %v28_v0 = vld [vmem:[%s663_s2 + $0x8] sm:$0xff]  ;;  %v27_v1 = vld [vmem:[%s663_s2] sm:$0xff]  ;;  %v23_v3 = vld [vmem:[%s664_s0 + $0x30] sm:$0xff] }
   0x2   :  { %74 = vmatpush.msra.mxu0 %v28_v0  ;;  %367 = vmatpush.msra.mxu3 %v28_v0  ;;  %v17_v2 = vld [vmem:[%s664_s0] sm:$0xff]  ;;  %v18_v4 = vld [vmem:[%s664_s0 + $0x8] sm:$0xff]  ;;  %v24_v5 = vld [vmem:[%s664_s0 + $0x38] sm:$0xff] }
   0x3   :  { %v19_v6 = vld [vmem:[%s664_s0 + $0x10] sm:$0xff]  ;;  %v25_v7 = vld [vmem:[%s664_s0 + $0x40] sm:$0xff]  ;;  %v20_v8 = vld [vmem:[%s664_s0 + $0x18] sm:$0xff] }
   0x4   :  { %75 = vmatpush.msra.mxu0 %v27_v1  ;;  %368 = vmatpush.msra.mxu3 %v27_v1  ;;  %v26_v9 = vld [vmem:[%s664_s0 + $0x48] sm:$0xff]  ;;  %v21_v10 = vld [vmem:[%s664_s0 + $0x20] sm:$0xff]  ;;  %v109_v28 = vld [vmem:[%s665_s1 + $0x10] sm:$0xff] }
   0x5   :  { %337 = vmatmul.msk.f32.vlgmr.msra.gmra.mxu0 %vm29_vm0, %v17_v2  ;;  %343 = vmatmul.msk.f32.vlgmr.msra.gmra.mxu3 %vm29_vm0, %v23_v3  ;;  %v22_v11 = vld [vmem:[%s664_s0 + $0x28] sm:$0xff]  ;;  %v107_v22 = vld [vmem:[%s665_s1] sm:$0xff]  ;;  %v113_v29 = vld [vmem:[%s665_s1 + $0x30] sm:$0xff] }
   0x6   :  { %v111_v23 = vld [vmem:[%s665_s1 + $0x20] sm:$0xff]  ;;  %v108_v25 = vld [vmem:[%s665_s1 + $0x8] sm:$0xff]  ;;  %v110_v30 = vld [vmem:[%s665_s1 + $0x18] sm:$0xff] }
   0x7   :  { %v115_v24 = vld [vmem:[%s665_s1 + $0x40] sm:$0xff]  ;;  %v112_v26 = vld [vmem:[%s665_s1 + $0x28] sm:$0xff]  ;;  %v114_v31 = vld [vmem:[%s665_s1 + $0x38] sm:$0xff] }
   0x8   :  { %v116_v27 = vld [vmem:[%s665_s1 + $0x48] sm:$0xff] }
   0xd   :  { %338 = vmatmul.msk.f32.gmra.mxu0 %vm29_vm0, %v18_v4  ;;  %344 = vmatmul.msk.f32.gmra.mxu3 %vm29_vm0, %v24_v5 }
  0x15   :  { %339 = vmatmul.msk.f32.gmra.mxu0 %vm29_vm0, %v19_v6  ;;  %345 = vmatmul.msk.f32.gmra.mxu3 %vm29_vm0, %v25_v7 }
  0x1d   :  { %340 = vmatmul.msk.f32.gmra.mxu0 %vm29_vm0, %v20_v8  ;;  %346 = vmatmul.msk.f32.gmra.mxu3 %vm29_vm0, %v26_v9 }
  0x25   :  { %341 = vmatmul.msk.f32.gmra.mxu0 %vm29_vm0, %v21_v10 }
  0x2d   :  { %342 = vmatmul.msk.f32.gmra.mxu0 %vm29_vm0, %v22_v11 }
  0x82   :  { %v77_v12 = vpop.f32.mrf.mxu0 }
  0x88   :  { %v95_v13 = vpop.f32.mrf.mxu3 }
  0x8a   :  { %v80_v14 = vpop.f32.mrf.mxu0 }
  0x90   :  { %v98_v15 = vpop.f32.mrf.mxu3 }
  0x92   :  { %v83_v16 = vpop.f32.mrf.mxu0 }
  0x98   :  { %v101_v17 = vpop.f32.mrf.mxu3 }
  0x9a   :  { %v86_v18 = vpop.f32.mrf.mxu0 }
  0xa0   :  { %v104_v19 = vpop.f32.mrf.mxu3 }
  0xa1   :  { %154 = vmatpush.msra.mxu1 %v104_v19  ;;  %369 = vmatpush.msra.mxu2 %v104_v19 }
  0xa2   :  { %370 = vmatpush.msrb.mxu3 %v104_v19  ;;  %v89_v20 = vpop.f32.mrf.mxu0 }
  0xa3   :  { %155 = vmatpush.msra.mxu1 %v101_v17  ;;  %371 = vmatpush.msra.mxu2 %v101_v17 }
  0xa4   :  { %372 = vmatpush.msrb.mxu3 %v101_v17 }
  0xa5   :  { %156 = vmatpush.msra.mxu1 %v98_v15  ;;  %373 = vmatpush.msra.mxu2 %v98_v15 }
  0xa6   :  { %374 = vmatpush.msrb.mxu3 %v98_v15  ;;  %v275_v15 = vld [vmem:[%s666_s3] sm:$0xff] }
  0xa7   :  { %157 = vmatpush.msra.mxu1 %v95_v13  ;;  %375 = vmatpush.msra.mxu2 %v95_v13 }
  0xa8   :  { %376 = vmatpush.msrb.mxu3 %v95_v13 }
  0xaa   :  { %v92_v21 = vpop.f32.mrf.mxu0 }
  0xab   :  { %158 = vmatpush.msra.mxu1 %v92_v21  ;;  %377 = vmatpush.msra.mxu2 %v92_v21 }
  0xac   :  { %378 = vmatpush.msrb.mxu3 %v92_v21 }
  0xad   :  { %159 = vmatpush.msra.mxu1 %v89_v20  ;;  %379 = vmatpush.msra.mxu2 %v89_v20 }
  0xae   :  { %380 = vmatpush.msrb.mxu3 %v89_v20  ;;  %v279_v20 = vld [vmem:[%s666_s3 + $0x20] sm:$0xff] }
  0xaf   :  { %160 = vmatpush.msra.mxu1 %v86_v18  ;;  %381 = vmatpush.msra.mxu2 %v86_v18 }
  0xb0   :  { %382 = vmatpush.msrb.mxu3 %v86_v18 }
  0xb1   :  { %161 = vmatpush.msra.mxu1 %v83_v16  ;;  %383 = vmatpush.msra.mxu2 %v83_v16 }
  0xb2   :  { %384 = vmatpush.msrb.mxu3 %v83_v16 }
  0xb3   :  { %162 = vmatpush.msra.mxu1 %v80_v14  ;;  %385 = vmatpush.msra.mxu2 %v80_v14 }
  0xb4   :  { %386 = vmatpush.msrb.mxu3 %v80_v14 }
  0xb5   :  { %163 = vmatpush.msra.mxu1 %v77_v12  ;;  %387 = vmatpush.msra.mxu2 %v77_v12 }
  0xb6   :  { %388 = vmatpush.msrb.mxu3 %v77_v12  ;;  %347 = vmatmul.msk.f32.vlgmr.msra.gmra.mxu1 %vm117_vm1, %v107_v22 }
  0xb7   :  { %351 = vmatmul.msk.f32.vlgmr.msra.gmra.mxu2 %vm117_vm1, %v111_v23  ;;  %355 = vmatmul.msk.f32.vlgmr.msrb.gmra.mxu3 %vm117_vm1, %v115_v24 }
  0xbe   :  { %348 = vmatmul.msk.f32.gmra.mxu1 %vm117_vm1, %v108_v25 }
  0xbf   :  { %352 = vmatmul.msk.f32.gmra.mxu2 %vm117_vm1, %v112_v26  ;;  %356 = vmatmul.msk.f32.gmra.mxu3 %vm117_vm1, %v116_v27 }
  0xc6   :  { %349 = vmatmul.msk.f32.gmra.mxu1 %vm117_vm1, %v109_v28 }
  0xc7   :  { %353 = vmatmul.msk.f32.gmra.mxu2 %vm117_vm1, %v113_v29 }
  0xce   :  { %350 = vmatmul.msk.f32.gmra.mxu1 %vm117_vm1, %v110_v30  ;;  %v357_v30 = vld [vmem:[%s666_s3 + $0x28] sm:$0xff] }
  0xcf   :  { %354 = vmatmul.msk.f32.gmra.mxu2 %vm117_vm1, %v114_v31 }
 0x133   :  { %v510_v32 = vpop.f32.mrf.mxu1 }
 0x13a   :  { %v512_v33 = vpop.f32.mrf.mxu2  ;;  %v514_v34 = vpop.f32.mrf.mxu3 }
 0x13b   :  { %v516_v35 = vpop.f32.mrf.mxu1 }
 0x142   :  { %v518_v36 = vpop.f32.mrf.mxu2  ;;  %v520_v37 = vpop.f32.mrf.mxu3 }
 0x143   :  { %v195_v38 = vsub.f32 %v510_v32, %v518_v36  ;;  %v199_v39 = vsub.f32 %v512_v33, %v520_v37  ;;  %v526_v40 = vpop.f32.mrf.mxu1  ;;  %v200_v56 = vadd.f32 %v518_v36, %v510_v32  ;;  %v204_v0 = vadd.f32 %v520_v37, %v512_v33 }
 0x145   :  { %v210_v41 = vmul.f32 0.25, %v195_v38  ;;  %v214_v42 = vmul.f32 0.25, %v199_v39  ;;  %v205_v2 = vmul.f32 0.5, %v200_v56  ;;  %v209_v8 = vmul.f32 0.5, %v204_v0 }
 0x147   :  { %v215_v43 = vmul.f32 %v210_v41, %v195_v38  ;;  %v219_v44 = vmul.f32 %v214_v42, %v199_v39  ;;  %v291_v11 = vsub.f32 %v510_v32, %v205_v2  ;;  %v312_v24 = vsub.f32 %v518_v36, %v205_v2  ;;  %v361_v42 = vld [vmem:[%s666_s3 + $0x48] sm:$0xff] }
 0x148   :  { %v295_v28 = vsub.f32 %v512_v33, %v209_v8  ;;  %v316_v32 = vsub.f32 %v520_v37, %v209_v8 }
 0x149   :  { %v220_v45 = vadd.f32 1e-05, %v215_v43  ;;  %v224_v46 = vadd.f32 1e-05, %v219_v44 }
 0x14a   :  { %v528_v47 = vpop.f32.mrf.mxu2 }
 0x14b   :  { %389 = vrsqrt.f32 %v220_v45  ;;  %v196_v48 = vsub.f32 %v516_v35, %v528_v47  ;;  %v532_v49 = vpop.f32.mrf.mxu1  ;;  %vm231_vm4 = vweird.f32 %v220_v45  ;;  %v201_v16 = vadd.f32 %v528_v47, %v516_v35 }
 0x14c   :  { %391 = vrsqrt.f32 %v224_v46  ;;  %v198_v50 = vsub.f32 %v532_v49, %v514_v34  ;;  %vm271_vm7 = vweird.f32 %v224_v46  ;;  %v203_v21 = vadd.f32 %v514_v34, %v532_v49 }
 0x14d   :  { %v211_v51 = vmul.f32 0.25, %v196_v48  ;;  %v206_v36 = vmul.f32 0.5, %v201_v16  ;;  %v277_v16 = vld [vmem:[%s666_s3 + $0x10] sm:$0xff] }
 0x14e   :  { %v213_v52 = vmul.f32 0.25, %v198_v50  ;;  %v208_v43 = vmul.f32 0.5, %v203_v21  ;;  %v359_v21 = vld [vmem:[%s666_s3 + $0x38] sm:$0xff] }
 0x14f   :  { %v216_v53 = vmul.f32 %v211_v51, %v196_v48 }
 0x150   :  { %v218_v54 = vmul.f32 %v213_v52, %v198_v50 }
 0x151   :  { %v390_v55 = vpop.eup %389  ;;  %v538_v57 = vadd.f32 1e-05, %v216_v53 }
 0x152   :  { %v392_v58 = vpop.eup %391  ;;  %v226_v59 = vmul.f32 %v390_v55, %v220_v45  ;;  %v540_v60 = vadd.f32 1e-05, %v218_v54  ;;  %v542_v61 = vpop.f32.mrf.mxu2  ;;  %vm232_vm2 = vweird.f32 %v390_v55 }
 0x153   :  { %v266_v62 = vmul.f32 %v392_v58, %v224_v46  ;;  %393 = vrsqrt.f32 %v538_v57  ;;  %v197_v1 = vsub.f32 %v526_v40, %v542_v61  ;;  %vm272_vm5 = vweird.f32 %v392_v58  ;;  %vm233_vm6 = vmor %vm231_vm4, %vm232_vm2 }
 0x154   :  { %v227_v63 = vmul.f32 %v390_v55, %v226_v59  ;;  %395 = vrsqrt.f32 %v540_v60  ;;  %vm273_vm8 = vmor %vm271_vm7, %vm272_vm5  ;;  %vm241_vm11 = vweird.f32 %v538_v57  ;;  %vm261_vm13 = vweird.f32 %v540_v60 }
 0x155   :  { %v267_v3 = vmul.f32 %v392_v58, %v266_v62  ;;  %v212_v5 = vmul.f32 0.25, %v197_v1  ;;  %v292_v62 = vsub.f32 %v516_v35, %v206_v36  ;;  %v358_v35 = vld [vmem:[%s666_s3 + $0x30] sm:$0xff] }
 0x156   :  { %v228_v4 = vmul.f32 0.5, %v227_v63  ;;  %v313_v63 = vsub.f32 %v528_v47, %v206_v36  ;;  %v202_v47 = vadd.f32 %v542_v61, %v526_v40 }
 0x157   :  { %v268_v6 = vmul.f32 0.5, %v267_v3  ;;  %v217_v9 = vmul.f32 %v212_v5, %v197_v1  ;;  %v294_v3 = vsub.f32 %v532_v49, %v208_v43 }
 0x158   :  { %v229_v7 = vsub.f32 1.5, %v228_v4  ;;  %v315_v4 = vsub.f32 %v514_v34, %v208_v43 }
 0x159   :  { %v550_v10 = vpop.eup %393  ;;  %v269_v12 = vsub.f32 1.5, %v268_v6  ;;  %v562_v18 = vadd.f32 1e-05, %v217_v9 }
 0x15a   :  { %v553_v13 = vpop.eup %395  ;;  %v230_v14 = vmul.f32 %v390_v55, %v229_v7  ;;  %v236_v17 = vmul.f32 %v550_v10, %v538_v57  ;;  %vm242_vm9 = vweird.f32 %v550_v10  ;;  %v360_v7 = vld [vmem:[%s666_s3 + $0x40] sm:$0xff] }
 0x15b   :  { %v270_v19 = vmul.f32 %v392_v58, %v269_v12  ;;  %v256_v22 = vmul.f32 %v553_v13, %v540_v60  ;;  %397 = vrsqrt.f32 %v562_v18  ;;  %vm262_vm10 = vweird.f32 %v553_v13  ;;  %vm243_vm12 = vmor %vm241_vm11, %vm242_vm9 }
 0x15c   :  { %v234_v23 = vsel %vm233_vm6, %v390_v55, %v230_v14  ;;  %v237_v25 = vmul.f32 %v550_v10, %v236_v17  ;;  %v276_v55 = vld [vmem:[%s666_s3 + $0x8] sm:$0xff]  ;;  %vm263_vm14 = vmor %vm261_vm13, %vm262_vm10  ;;  %vm251_vm0 = vweird.f32 %v562_v18 }
 0x15d   :  { %v280_v26 = vmul.f32 %v275_v15, %v234_v23  ;;  %v274_v27 = vsel %vm273_vm8, %v392_v58, %v270_v19  ;;  %v257_v29 = vmul.f32 %v553_v13, %v256_v22  ;;  %v278_v58 = vld [vmem:[%s666_s3 + $0x18] sm:$0xff]  ;;  %v207_v15 = vmul.f32 0.5, %v202_v47 }
 0x15e   :  { %v284_v31 = vmul.f32 %v279_v20, %v274_v27  ;;  %v238_v38 = vmul.f32 0.5, %v237_v25 }
 0x15f   :  { %v296_v39 = vmul.f32 %v291_v11, %v280_v26  ;;  %v317_v41 = vmul.f32 %v312_v24, %v280_v26  ;;  %v258_v44 = vmul.f32 0.5, %v257_v29  ;;  %v293_v19 = vsub.f32 %v526_v40, %v207_v15 }
 0x160   :  { %v300_v33 = vmul.f32 %v295_v28, %v284_v31  ;;  %v321_v45 = vmul.f32 %v316_v32, %v284_v31  ;;  %v239_v46 = vsub.f32 1.5, %v238_v38  ;;  %v314_v20 = vsub.f32 %v542_v61, %v207_v15 }
 0x161   :  { %v301_v48 = vadd.f32 %v357_v30, %v296_v39  ;;  %v322_v50 = vadd.f32 %v357_v30, %v317_v41  ;;  %v259_v51 = vsub.f32 1.5, %v258_v44  ;;  %v398_v37 = vpop.eup %397 }
 0x162   :  { %v305_v52 = vadd.f32 %v361_v42, %v300_v33  ;;  %v326_v53 = vadd.f32 %v361_v42, %v321_v45  ;;  %v240_v54 = vmul.f32 %v550_v10, %v239_v46  ;;  %v246_v57 = vmul.f32 %v398_v37, %v562_v18 }
 0x163   :  { %307 = vst.msk [vmem:[%s667_s4] sm:$0xff] %vm306_vm3, %v301_v48  ;;  %v260_v56 = vmul.f32 %v553_v13, %v259_v51  ;;  %vm252_vm15 = vweird.f32 %v398_v37 }
 0x164   :  { %362 = vst.msk [vmem:[%s667_s4 + $0x28] sm:$0xff] %vm306_vm3, %v322_v50  ;;  %v244_v59 = vsel %vm243_vm12, %v550_v10, %v240_v54  ;;  %v247_v1 = vmul.f32 %v398_v37, %v246_v57  ;;  %vm253_vm1 = vmor %vm251_vm0, %vm252_vm15 }
 0x165   :  { %311 = vst.msk [vmem:[%s667_s4 + $0x20] sm:$0xff] %vm306_vm3, %v305_v52  ;;  %v281_v60 = vmul.f32 %v276_v55, %v244_v59  ;;  %v264_v0 = vsel %vm263_vm14, %v553_v13, %v260_v56 }
 0x166   :  { %366 = vst.msk [vmem:[%s667_s4 + $0x48] sm:$0xff] %vm306_vm3, %v326_v53  ;;  %v283_v2 = vmul.f32 %v278_v58, %v264_v0  ;;  %v248_v8 = vmul.f32 0.5, %v247_v1 }
 0x167   :  { %v297_v5 = vmul.f32 %v292_v62, %v281_v60  ;;  %v318_v6 = vmul.f32 %v313_v63, %v281_v60 }
 0x168   :  { %v299_v9 = vmul.f32 %v294_v3, %v283_v2  ;;  %v320_v10 = vmul.f32 %v315_v4, %v283_v2  ;;  %v249_v13 = vsub.f32 1.5, %v248_v8 }
 0x169   :  { %v302_v11 = vadd.f32 %v358_v35, %v297_v5  ;;  %v323_v12 = vadd.f32 %v358_v35, %v318_v6 }
 0x16a   :  { %v304_v14 = vadd.f32 %v360_v7, %v299_v9  ;;  %v325_v49 = vadd.f32 %v360_v7, %v320_v10  ;;  %v250_v34 = vmul.f32 %v398_v37, %v249_v13 }
 0x16b   :  { %308 = vst.msk [vmem:[%s667_s4 + $0x8] sm:$0xff] %vm306_vm3, %v302_v11 }
 0x16c   :  { %363 = vst.msk [vmem:[%s667_s4 + $0x30] sm:$0xff] %vm306_vm3, %v323_v12  ;;  %v254_v17 = vsel %vm253_vm1, %v398_v37, %v250_v34 }
 0x16d   :  { %310 = vst.msk [vmem:[%s667_s4 + $0x18] sm:$0xff] %vm306_vm3, %v304_v14  ;;  %v282_v18 = vmul.f32 %v277_v16, %v254_v17 }
 0x16e   :  { %365 = vst.msk [vmem:[%s667_s4 + $0x40] sm:$0xff] %vm306_vm3, %v325_v49 }
 0x16f   :  { %v298_v22 = vmul.f32 %v293_v19, %v282_v18  ;;  %v319_v23 = vmul.f32 %v314_v20, %v282_v18 }
 0x171   :  { %v303_v24 = vadd.f32 %v359_v21, %v298_v22  ;;  %v324_v25 = vadd.f32 %v359_v21, %v319_v23 }
 0x173   :  { %309 = vst.msk [vmem:[%s667_s4 + $0x10] sm:$0xff] %vm306_vm3, %v303_v24 }
 0x174   :  { %364 = vst.msk [vmem:[%s667_s4 + $0x38] sm:$0xff] %vm306_vm3, %v324_v25 }

</bundles_post_ra>
